<compile_context>
chip_gen: v7x
topology: tpu7x:2x2x1
jax: 0.10.0
libtpu: 0.0.40
codegen_flags: <defaults>
</compile_context>

<pallas_src>
import jax
import jax.numpy as jnp
from jax import lax
from jax.experimental import pallas as pl
from jax.experimental.pallas import tpu as pltpu

# ---- model hyper-parameters (n_head * d_k == d_model == d_output so the
#      residual add in the PyTorch forward is shape-valid) ----
B = 2
L = 16                        # even (pair-fold); odd-L path not implemented
N_HEAD = 2
D_K = 4
D_V = 4
D_MODEL = N_HEAD * D_K        # 8
D_OUT = D_MODEL               # 8
L_HALF = L // 2               # 8
L_OUT = L_HALF                # 8
HDK = N_HEAD * D_K            # 8
HDV = N_HEAD * D_V            # 8

# Fused-constant buffer layout (sublane-stacked, f32, built once at init):
#   rows  0: 8, cols 0:40  W_x   (see header comment)
#   rows  8:16, cols 0: 8  Wd_top = w_down^T[0:D_OUT]
#   rows 16:24, cols 0: 8  Wd_bot = w_down^T[D_OUT:2*D_OUT]
#   row  24 b_down ; row 25 ln_gamma ; row 26 ln_beta   (cols 0:8)
Q_OFF = HDK                                  # 8
K_OFF = 2 * HDK                              # 16
V_OFF = 3 * HDK                              # 24
CONST_COLS = 3 * HDK + N_HEAD * D_OUT        # 40
CONST_ROWS = D_MODEL + 2 * D_OUT + 3         # 27


def _mha_down_kernel(x_ref, c_ref, out_ref):
    # ---- fused constants (single input DMA, static ref sub-window loads) ----
    w_x = c_ref[0:D_MODEL, :]                                        # (8, 40)
    wd_top = c_ref[D_MODEL:D_MODEL + D_OUT, 0:D_OUT]                 # (8, 8)
    wd_bot = c_ref[D_MODEL + D_OUT:D_MODEL + 2 * D_OUT, 0:D_OUT]     # (8, 8)
    vec = c_ref[D_MODEL + 2 * D_OUT:D_MODEL + 2 * D_OUT + 3, 0:D_OUT]
    b_down = vec[0:1, :]
    ln_g = vec[1:2, :]
    ln_b = vec[2:3, :]

    # ---- in-kernel even/odd row split (stride-2 sublane reads) ----
    # Rows become [b0 even | b0 odd | b1 even | b1 odd] so the later pair-fold
    # is two contiguous slices -- no host-side permute, no selection matrices.
    parts = []
    for b in range(B):
        parts.append(x_ref[pl.ds(b * L, L_HALF, stride=2), :])       # pos 0,2,..
        parts.append(x_ref[pl.ds(b * L + 1, L_HALF, stride=2), :])   # pos 1,3,..
    x_perm = jnp.concatenate(parts, axis=0)                          # (B*L, 8)

    # ---- single fused projection: [q0 | Q*scale | K | (V@Wfc)_head0 | _head1] ----
    proj = jnp.dot(x_perm, w_x, preferred_element_type=jnp.float32)  # (B*L, 40)

    nt = (((1,), (1,)), ((), ()))     # contract last dims: Q @ K^T without .T
    for b in range(B):                # static unroll over (batch, head)
        pb = proj[b * L:(b + 1) * L, :]                              # (L, 40)
        q0 = pb[:, 0:HDK]                                            # residual
        o = None
        for h in range(N_HEAD):
            qh = pb[:, Q_OFF + h * D_K:Q_OFF + (h + 1) * D_K]        # pre-scaled
            kh = pb[:, K_OFF + h * D_K:K_OFF + (h + 1) * D_K]
            vfc = pb[:, V_OFF + h * D_OUT:V_OFF + (h + 1) * D_OUT]   # V_h @ Wfc_h
            s = lax.dot_general(qh, kh, nt,
                                preferred_element_type=jnp.float32)  # (L, L)
            s = s - jnp.max(s, axis=-1, keepdims=True)
            p = jnp.exp(s)
            p = p * pl.reciprocal(jnp.sum(p, axis=-1, keepdims=True),
                                  approx=True)
            # TODO(synk): attention dropout (p=0.1) skipped -- eval mode.
            oh = jnp.dot(p, vfc, preferred_element_type=jnp.float32)
            o = oh if o is None else o + oh                          # (L, D_OUT)

        # ---- residual + LayerNorm(eps=1e-6) ----
        # TODO(synk): post-fc dropout (p=0.1) skipped -- eval mode.
        o = o + q0
        mu = jnp.mean(o, axis=-1, keepdims=True)
        var = jnp.mean((o - mu) * (o - mu), axis=-1, keepdims=True)
        o = (o - mu) * lax.rsqrt(var + 1e-6)
        o = o * ln_g + ln_b

        # ---- pair-fold + downsample with split weights (no lane concat) ----
        even = o[0:L_HALF, :]                  # original positions 0,2,4,...
        odd = o[L_HALF:L, :]                   # original positions 1,3,5,...
        res = (jnp.dot(even, wd_top, preferred_element_type=jnp.float32)
               + jnp.dot(odd, wd_bot, preferred_element_type=jnp.float32)
               + b_down)
        # TODO(synk): 8-lane output store is masked; output is 512 B total so a
        # lane-densifying relayout would cost more than it saves.
        out_ref[b * L_OUT:(b + 1) * L_OUT, :] = res


def prepare_constants(params):
    """Build the fused constant buffer ONCE at init (hoisted off the call path)."""
    (w_reduce, w_qs, w_ks, w_vs, w_fc, w_down, b_down, ln_g, ln_b) = params
    scale = 1.0 / (D_K ** 0.5)
    wr_t = w_reduce.T                                   # (D_MODEL, HDK)
    wvs_t = w_vs.T                                      # (HDK, HDV)
    wfc_t = w_fc.T                                      # (HDV, D_OUT)
    blocks = [wr_t,                                     # q0 columns
              (wr_t @ w_qs.T) * scale,                  # pre-scaled Q columns
              wr_t @ w_ks.T]                            # K columns
    for h in range(N_HEAD):                             # per-head V@Wfc columns
        blocks.append(wr_t @ wvs_t[:, h * D_V:(h + 1) * D_V]
                      @ wfc_t[h * D_V:(h + 1) * D_V, :])
    w_x = jnp.concatenate(blocks, axis=1)               # (D_MODEL, 40)
    wd_t = w_down.T                                     # (2*D_OUT, D_OUT)

    c = jnp.zeros((CONST_ROWS, CONST_COLS), jnp.float32)
    c = c.at[0:D_MODEL, :].set(w_x)
    c = c.at[D_MODEL:D_MODEL + D_OUT, 0:D_OUT].set(wd_t[0:D_OUT])
    c = c.at[D_MODEL + D_OUT:D_MODEL + 2 * D_OUT, 0:D_OUT].set(wd_t[D_OUT:])
    c = c.at[D_MODEL + 2 * D_OUT, 0:D_OUT].set(b_down[0])
    c = c.at[D_MODEL + 2 * D_OUT + 1, 0:D_OUT].set(ln_g[0])
    c = c.at[D_MODEL + 2 * D_OUT + 2, 0:D_OUT].set(ln_b[0])
    return c


def mha_down(x, const):
    assert L % 2 == 0  # TODO(synk): odd seq-len zero-pad path not implemented.
    x2 = x.reshape(B * L, D_MODEL)      # contiguous reshape: metadata-only
    out_flat = pl.pallas_call(
        _mha_down_kernel,
        out_shape=jax.ShapeDtypeStruct((B * L_OUT, D_OUT), jnp.float32),
        grid_spec=pltpu.PrefetchScalarGridSpec(
            num_scalar_prefetch=0,
            grid=(1,),
            in_specs=[
                pl.BlockSpec((B * L, D_MODEL), lambda i: (0, 0)),
                pl.BlockSpec((CONST_ROWS, CONST_COLS), lambda i: (0, 0)),
            ],
            out_specs=pl.BlockSpec((B * L_OUT, D_OUT), lambda i: (0, 0)),
        ),
        compiler_params=pltpu.CompilerParams(
            dimension_semantics=("arbitrary",)),
    )(x2, const)
    return out_flat.reshape(B, L_OUT, D_OUT)


def _reference(x, params):
    """Pure-JAX reference mirroring the PyTorch forward (eval mode)."""
    (w_reduce, w_qs, w_ks, w_vs, w_fc, w_down, b_down, ln_g, ln_b) = params
    q0 = x @ w_reduce.T
    Q = (q0 @ w_qs.T).reshape(B, L, N_HEAD, D_K).transpose(0, 2, 1, 3)
    K = (q0 @ w_ks.T).reshape(B, L, N_HEAD, D_K).transpose(0, 2, 1, 3)
    V = (q0 @ w_vs.T).reshape(B, L, N_HEAD, D_V).transpose(0, 2, 1, 3)
    attn = jax.nn.softmax((Q / (D_K ** 0.5)) @ jnp.swapaxes(K, 2, 3), axis=-1)
    out = (attn @ V).transpose(0, 2, 1, 3).reshape(B, L, N_HEAD * D_V)
    q = out @ w_fc.T + q0
    mu = q.mean(-1, keepdims=True)
    var = ((q - mu) ** 2).mean(-1, keepdims=True)
    q = (q - mu) / jnp.sqrt(var + 1e-6) * ln_g[0] + ln_b[0]
    if L % 2 != 0:
        q = jnp.concatenate([q, jnp.zeros((B, 1, D_OUT), q.dtype)], axis=1)
    q = q.reshape(B, L_OUT, 2 * D_OUT)
    return q @ w_down.T + b_down[0]


if __name__ == "__main__":
    key = jax.random.PRNGKey(0)
    ks = jax.random.split(key, 9)
    x = jax.random.normal(ks[0], (B, L, D_MODEL), jnp.float32)

    w_reduce = 0.2 * jax.random.normal(ks[1], (N_HEAD * D_K, D_MODEL), jnp.float32)
    w_qs = 0.2 * jax.random.normal(ks[2], (N_HEAD * D_K, N_HEAD * D_K), jnp.float32)
    w_ks = 0.2 * jax.random.normal(ks[3], (N_HEAD * D_K, N_HEAD * D_K), jnp.float32)
    w_vs = 0.2 * jax.random.normal(ks[4], (N_HEAD * D_V, N_HEAD * D_K), jnp.float32)
    w_fc = 0.2 * jax.random.normal(ks[5], (D_OUT, N_HEAD * D_V), jnp.float32)
    w_down = 0.2 * jax.random.normal(ks[6], (D_OUT, 2 * D_OUT), jnp.float32)
    b_down = 0.1 * jax.random.normal(ks[7], (1, D_OUT), jnp.float32)
    ln_g = jnp.ones((1, D_OUT), jnp.float32)
    ln_b = jnp.zeros((1, D_OUT), jnp.float32)

    params = (w_reduce, w_qs, w_ks, w_vs, w_fc, w_down, b_down, ln_g, ln_b)
    const = prepare_constants(params)          # built once, reused every call

    out = mha_down(x, const)
    out = jax.block_until_ready(out)

    ref = _reference(x, params)
    assert out.shape == (B, L_OUT, D_OUT), out.shape
    # Tolerance 1e-3 accommodates the host-side weight fusion (associativity)
    # and the EUP approximate reciprocal; observed error is far smaller, and
    # any real indexing/math bug would exceed this by orders of magnitude.
    assert jnp.allclose(out, ref, atol=1e-3, rtol=1e-3), \
        float(jnp.max(jnp.abs(out - ref)))
    print("KERNEL_OK")
</pallas_src>

<mosaic_0001>
module attributes {stable_mosaic.version = 11 : i64} {
  func.func @_mha_down_kernel(%arg0: i32, %arg1: memref<32x8xf32, #tpu.memory_space<vmem>>, %arg2: memref<27x40xf32, #tpu.memory_space<vmem>>, %arg3: memref<16x8xf32, #tpu.memory_space<vmem>>) attributes {dimension_semantics = [#tpu.dimension_semantics<arbitrary>], iteration_bounds = array<i64: 1>, scalar_prefetch = 0 : i64, scratch_operands = 0 : i64, tpu.core_type = #tpu.core_type<tc>, window_params = [{pipeline_mode = #tpu.pipeline_mode<synchronous>, transform_indices = @transform_0, window_bounds = array<i64: 32, 8>}, {pipeline_mode = #tpu.pipeline_mode<synchronous>, transform_indices = @transform_1, window_bounds = array<i64: 27, 40>}, {pipeline_mode = #tpu.pipeline_mode<synchronous>, transform_indices = @transform_2, window_bounds = array<i64: 16, 8>}]} {
    %c0 = arith.constant 0 : index
    %c0_0 = arith.constant 0 : index
    %0 = vector.load %arg2[%c0, %c0_0] : memref<27x40xf32, #tpu.memory_space<vmem>>, vector<8x40xf32>
    %c8 = arith.constant 8 : index
    %c0_1 = arith.constant 0 : index
    %1 = vector.load %arg2[%c8, %c0_1] : memref<27x40xf32, #tpu.memory_space<vmem>>, vector<8x8xf32>
    %c16 = arith.constant 16 : index
    %c0_2 = arith.constant 0 : index
    %2 = vector.load %arg2[%c16, %c0_2] : memref<27x40xf32, #tpu.memory_space<vmem>>, vector<8x8xf32>
    %c24 = arith.constant 24 : index
    %c0_3 = arith.constant 0 : index
    %3 = vector.load %arg2[%c24, %c0_3] : memref<27x40xf32, #tpu.memory_space<vmem>>, vector<3x8xf32>
    %4 = vector.extract_strided_slice %3 {offsets = [0, 0], sizes = [1, 8], strides = [1, 1]} : vector<3x8xf32> to vector<1x8xf32>
    %5 = vector.extract_strided_slice %3 {offsets = [1, 0], sizes = [1, 8], strides = [1, 1]} : vector<3x8xf32> to vector<1x8xf32>
    %6 = vector.extract_strided_slice %3 {offsets = [2, 0], sizes = [1, 8], strides = [1, 1]} : vector<3x8xf32> to vector<1x8xf32>
    %c0_4 = arith.constant 0 : index
    %c0_5 = arith.constant 0 : index
    %7 = tpu.strided_load %arg1[%c0_4, %c0_5] {strides = array<i32: 2, 1>} : memref<32x8xf32, #tpu.memory_space<vmem>>, vector<8x8xf32>
    %c1 = arith.constant 1 : index
    %c0_6 = arith.constant 0 : index
    %8 = tpu.strided_load %arg1[%c1, %c0_6] {strides = array<i32: 2, 1>} : memref<32x8xf32, #tpu.memory_space<vmem>>, vector<8x8xf32>
    %c16_7 = arith.constant 16 : index
    %c0_8 = arith.constant 0 : index
    %9 = tpu.strided_load %arg1[%c16_7, %c0_8] {strides = array<i32: 2, 1>} : memref<32x8xf32, #tpu.memory_space<vmem>>, vector<8x8xf32>
    %c17 = arith.constant 17 : index
    %c0_9 = arith.constant 0 : index
    %10 = tpu.strided_load %arg1[%c17, %c0_9] {strides = array<i32: 2, 1>} : memref<32x8xf32, #tpu.memory_space<vmem>>, vector<8x8xf32>
    %11 = tpu.concatenate %7, %8, %9, %10 in 0 : vector<8x8xf32>, vector<8x8xf32>, vector<8x8xf32>, vector<8x8xf32> -> vector<32x8xf32>
    %cst = arith.constant dense<0.000000e+00> : vector<32x40xf32>
    %12 = tpu.matmul %11, %0, %cst {dimension_numbers = #tpu.dot_dimension_numbers<[1], [0], [0], [1], [0, 0, 1, 1], [], []>} : vector<32x8xf32>, vector<8x40xf32>, vector<32x40xf32> -> vector<32x40xf32>
    %13 = vector.extract_strided_slice %12 {offsets = [0, 0], sizes = [16, 40], strides = [1, 1]} : vector<32x40xf32> to vector<16x40xf32>
    %14 = vector.extract_strided_slice %13 {offsets = [0, 0], sizes = [16, 8], strides = [1, 1]} : vector<16x40xf32> to vector<16x8xf32>
    %15 = vector.extract_strided_slice %13 {offsets = [0, 8], sizes = [16, 4], strides = [1, 1]} : vector<16x40xf32> to vector<16x4xf32>
    %16 = vector.extract_strided_slice %13 {offsets = [0, 16], sizes = [16, 4], strides = [1, 1]} : vector<16x40xf32> to vector<16x4xf32>
    %17 = vector.extract_strided_slice %13 {offsets = [0, 24], sizes = [16, 8], strides = [1, 1]} : vector<16x40xf32> to vector<16x8xf32>
    %cst_10 = arith.constant dense<0.000000e+00> : vector<16x16xf32>
    %18 = tpu.matmul %15, %16, %cst_10 {dimension_numbers = #tpu.dot_dimension_numbers<[1], [1], [0], [0], [0, 0, 1, 0], [], []>} : vector<16x4xf32>, vector<16x4xf32>, vector<16x16xf32> -> vector<16x16xf32>
    %cst_11 = arith.constant dense<0xFF800000> : vector<16xf32>
    %19 = vector.multi_reduction <maximumf>, %18, %cst_11 [1] : vector<16x16xf32> to vector<16xf32>
    %20 = vector.shape_cast %19 : vector<16xf32> to vector<16x1xf32>
    %21 = vector.broadcast %20 : vector<16x1xf32> to vector<16x16xf32>
    %22 = arith.subf %18, %21 : vector<16x16xf32>
    %23 = math.exp %22 : vector<16x16xf32>
    %cst_12 = arith.constant dense<0.000000e+00> : vector<16xf32>
    %24 = vector.multi_reduction <add>, %23, %cst_12 [1] : vector<16x16xf32> to vector<16xf32>
    %25 = vector.shape_cast %24 : vector<16xf32> to vector<16x1xf32>
    %26 = tpu.reciprocal %25 {approx = true} : vector<16x1xf32> -> vector<16x1xf32>
    %27 = vector.broadcast %26 : vector<16x1xf32> to vector<16x16xf32>
    %28 = arith.mulf %23, %27 : vector<16x16xf32>
    %cst_13 = arith.constant dense<0.000000e+00> : vector<16x8xf32>
    %29 = tpu.matmul %28, %17, %cst_13 {dimension_numbers = #tpu.dot_dimension_numbers<[1], [0], [0], [1], [0, 0, 1, 1], [], []>} : vector<16x16xf32>, vector<16x8xf32>, vector<16x8xf32> -> vector<16x8xf32>
    %30 = vector.extract_strided_slice %13 {offsets = [0, 12], sizes = [16, 4], strides = [1, 1]} : vector<16x40xf32> to vector<16x4xf32>
    %31 = vector.extract_strided_slice %13 {offsets = [0, 20], sizes = [16, 4], strides = [1, 1]} : vector<16x40xf32> to vector<16x4xf32>
    %32 = vector.extract_strided_slice %13 {offsets = [0, 32], sizes = [16, 8], strides = [1, 1]} : vector<16x40xf32> to vector<16x8xf32>
    %cst_14 = arith.constant dense<0.000000e+00> : vector<16x16xf32>
    %33 = tpu.matmul %30, %31, %cst_14 {dimension_numbers = #tpu.dot_dimension_numbers<[1], [1], [0], [0], [0, 0, 1, 0], [], []>} : vector<16x4xf32>, vector<16x4xf32>, vector<16x16xf32> -> vector<16x16xf32>
    %cst_15 = arith.constant dense<0xFF800000> : vector<16xf32>
    %34 = vector.multi_reduction <maximumf>, %33, %cst_15 [1] : vector<16x16xf32> to vector<16xf32>
    %35 = vector.shape_cast %34 : vector<16xf32> to vector<16x1xf32>
    %36 = vector.broadcast %35 : vector<16x1xf32> to vector<16x16xf32>
    %37 = arith.subf %33, %36 : vector<16x16xf32>
    %38 = math.exp %37 : vector<16x16xf32>
    %cst_16 = arith.constant dense<0.000000e+00> : vector<16xf32>
    %39 = vector.multi_reduction <add>, %38, %cst_16 [1] : vector<16x16xf32> to vector<16xf32>
    %40 = vector.shape_cast %39 : vector<16xf32> to vector<16x1xf32>
    %41 = tpu.reciprocal %40 {approx = true} : vector<16x1xf32> -> vector<16x1xf32>
    %42 = vector.broadcast %41 : vector<16x1xf32> to vector<16x16xf32>
    %43 = arith.mulf %38, %42 : vector<16x16xf32>
    %cst_17 = arith.constant dense<0.000000e+00> : vector<16x8xf32>
    %44 = tpu.matmul %43, %32, %cst_17 {dimension_numbers = #tpu.dot_dimension_numbers<[1], [0], [0], [1], [0, 0, 1, 1], [], []>} : vector<16x16xf32>, vector<16x8xf32>, vector<16x8xf32> -> vector<16x8xf32>
    %45 = arith.addf %29, %44 : vector<16x8xf32>
    %46 = arith.addf %45, %14 : vector<16x8xf32>
    %cst_18 = arith.constant dense<0.000000e+00> : vector<16xf32>
    %47 = vector.multi_reduction <add>, %46, %cst_18 [1] : vector<16x8xf32> to vector<16xf32>
    %48 = vector.shape_cast %47 : vector<16xf32> to vector<16x1xf32>
    %cst_19 = arith.constant 8.000000e+00 : f32
    %49 = vector.broadcast %cst_19 : f32 to vector<16x1xf32>
    %50 = arith.divf %48, %49 : vector<16x1xf32>
    %51 = vector.broadcast %50 : vector<16x1xf32> to vector<16x8xf32>
    %52 = arith.subf %46, %51 : vector<16x8xf32>
    %53 = vector.broadcast %50 : vector<16x1xf32> to vector<16x8xf32>
    %54 = arith.subf %46, %53 : vector<16x8xf32>
    %55 = arith.mulf %52, %54 : vector<16x8xf32>
    %cst_20 = arith.constant dense<0.000000e+00> : vector<16xf32>
    %56 = vector.multi_reduction <add>, %55, %cst_20 [1] : vector<16x8xf32> to vector<16xf32>
    %57 = vector.shape_cast %56 : vector<16xf32> to vector<16x1xf32>
    %cst_21 = arith.constant 8.000000e+00 : f32
    %58 = vector.broadcast %cst_21 : f32 to vector<16x1xf32>
    %59 = arith.divf %57, %58 : vector<16x1xf32>
    %60 = vector.broadcast %50 : vector<16x1xf32> to vector<16x8xf32>
    %61 = arith.subf %46, %60 : vector<16x8xf32>
    %cst_22 = arith.constant 9.99999997E-7 : f32
    %62 = vector.broadcast %cst_22 : f32 to vector<16x1xf32>
    %63 = arith.addf %59, %62 : vector<16x1xf32>
    %64 = math.rsqrt %63 : vector<16x1xf32>
    %65 = vector.broadcast %64 : vector<16x1xf32> to vector<16x8xf32>
    %66 = arith.mulf %61, %65 : vector<16x8xf32>
    %67 = vector.broadcast %5 : vector<1x8xf32> to vector<16x8xf32>
    %68 = arith.mulf %66, %67 : vector<16x8xf32>
    %69 = vector.broadcast %6 : vector<1x8xf32> to vector<16x8xf32>
    %70 = arith.addf %68, %69 : vector<16x8xf32>
    %71 = vector.extract_strided_slice %70 {offsets = [0, 0], sizes = [8, 8], strides = [1, 1]} : vector<16x8xf32> to vector<8x8xf32>
    %72 = vector.extract_strided_slice %70 {offsets = [8, 0], sizes = [8, 8], strides = [1, 1]} : vector<16x8xf32> to vector<8x8xf32>
    %cst_23 = arith.constant dense<0.000000e+00> : vector<8x8xf32>
    %73 = tpu.matmul %71, %1, %cst_23 {dimension_numbers = #tpu.dot_dimension_numbers<[1], [0], [0], [1], [0, 0, 1, 1], [], []>} : vector<8x8xf32>, vector<8x8xf32>, vector<8x8xf32> -> vector<8x8xf32>
    %cst_24 = arith.constant dense<0.000000e+00> : vector<8x8xf32>
    %74 = tpu.matmul %72, %2, %cst_24 {dimension_numbers = #tpu.dot_dimension_numbers<[1], [0], [0], [1], [0, 0, 1, 1], [], []>} : vector<8x8xf32>, vector<8x8xf32>, vector<8x8xf32> -> vector<8x8xf32>
    %75 = arith.addf %73, %74 : vector<8x8xf32>
    %76 = vector.broadcast %4 : vector<1x8xf32> to vector<8x8xf32>
    %77 = arith.addf %75, %76 : vector<8x8xf32>
    %c0_25 = arith.constant 0 : index
    %c0_26 = arith.constant 0 : index
    %78 = vector.load %arg3[%c0_25, %c0_26] : memref<16x8xf32, #tpu.memory_space<vmem>>, vector<8x8xf32>
    tpu.vector_store %arg3[%c0_25, %c0_26], %77 {strides = array<i32>} : memref<16x8xf32, #tpu.memory_space<vmem>>, vector<8x8xf32>,
    %79 = vector.extract_strided_slice %12 {offsets = [16, 0], sizes = [16, 40], strides = [1, 1]} : vector<32x40xf32> to vector<16x40xf32>
    %80 = vector.extract_strided_slice %79 {offsets = [0, 0], sizes = [16, 8], strides = [1, 1]} : vector<16x40xf32> to vector<16x8xf32>
    %81 = vector.extract_strided_slice %79 {offsets = [0, 8], sizes = [16, 4], strides = [1, 1]} : vector<16x40xf32> to vector<16x4xf32>
    %82 = vector.extract_strided_slice %79 {offsets = [0, 16], sizes = [16, 4], strides = [1, 1]} : vector<16x40xf32> to vector<16x4xf32>
    %83 = vector.extract_strided_slice %79 {offsets = [0, 24], sizes = [16, 8], strides = [1, 1]} : vector<16x40xf32> to vector<16x8xf32>
    %cst_27 = arith.constant dense<0.000000e+00> : vector<16x16xf32>
    %84 = tpu.matmul %81, %82, %cst_27 {dimension_numbers = #tpu.dot_dimension_numbers<[1], [1], [0], [0], [0, 0, 1, 0], [], []>} : vector<16x4xf32>, vector<16x4xf32>, vector<16x16xf32> -> vector<16x16xf32>
    %cst_28 = arith.constant dense<0xFF800000> : vector<16xf32>
    %85 = vector.multi_reduction <maximumf>, %84, %cst_28 [1] : vector<16x16xf32> to vector<16xf32>
    %86 = vector.shape_cast %85 : vector<16xf32> to vector<16x1xf32>
    %87 = vector.broadcast %86 : vector<16x1xf32> to vector<16x16xf32>
    %88 = arith.subf %84, %87 : vector<16x16xf32>
    %89 = math.exp %88 : vector<16x16xf32>
    %cst_29 = arith.constant dense<0.000000e+00> : vector<16xf32>
    %90 = vector.multi_reduction <add>, %89, %cst_29 [1] : vector<16x16xf32> to vector<16xf32>
    %91 = vector.shape_cast %90 : vector<16xf32> to vector<16x1xf32>
    %92 = tpu.reciprocal %91 {approx = true} : vector<16x1xf32> -> vector<16x1xf32>
    %93 = vector.broadcast %92 : vector<16x1xf32> to vector<16x16xf32>
    %94 = arith.mulf %89, %93 : vector<16x16xf32>
    %cst_30 = arith.constant dense<0.000000e+00> : vector<16x8xf32>
    %95 = tpu.matmul %94, %83, %cst_30 {dimension_numbers = #tpu.dot_dimension_numbers<[1], [0], [0], [1], [0, 0, 1, 1], [], []>} : vector<16x16xf32>, vector<16x8xf32>, vector<16x8xf32> -> vector<16x8xf32>
    %96 = vector.extract_strided_slice %79 {offsets = [0, 12], sizes = [16, 4], strides = [1, 1]} : vector<16x40xf32> to vector<16x4xf32>
    %97 = vector.extract_strided_slice %79 {offsets = [0, 20], sizes = [16, 4], strides = [1, 1]} : vector<16x40xf32> to vector<16x4xf32>
    %98 = vector.extract_strided_slice %79 {offsets = [0, 32], sizes = [16, 8], strides = [1, 1]} : vector<16x40xf32> to vector<16x8xf32>
    %cst_31 = arith.constant dense<0.000000e+00> : vector<16x16xf32>
    %99 = tpu.matmul %96, %97, %cst_31 {dimension_numbers = #tpu.dot_dimension_numbers<[1], [1], [0], [0], [0, 0, 1, 0], [], []>} : vector<16x4xf32>, vector<16x4xf32>, vector<16x16xf32> -> vector<16x16xf32>
    %cst_32 = arith.constant dense<0xFF800000> : vector<16xf32>
    %100 = vector.multi_reduction <maximumf>, %99, %cst_32 [1] : vector<16x16xf32> to vector<16xf32>
    %101 = vector.shape_cast %100 : vector<16xf32> to vector<16x1xf32>
    %102 = vector.broadcast %101 : vector<16x1xf32> to vector<16x16xf32>
    %103 = arith.subf %99, %102 : vector<16x16xf32>
    %104 = math.exp %103 : vector<16x16xf32>
    %cst_33 = arith.constant dense<0.000000e+00> : vector<16xf32>
    %105 = vector.multi_reduction <add>, %104, %cst_33 [1] : vector<16x16xf32> to vector<16xf32>
    %106 = vector.shape_cast %105 : vector<16xf32> to vector<16x1xf32>
    %107 = tpu.reciprocal %106 {approx = true} : vector<16x1xf32> -> vector<16x1xf32>
    %108 = vector.broadcast %107 : vector<16x1xf32> to vector<16x16xf32>
    %109 = arith.mulf %104, %108 : vector<16x16xf32>
    %cst_34 = arith.constant dense<0.000000e+00> : vector<16x8xf32>
    %110 = tpu.matmul %109, %98, %cst_34 {dimension_numbers = #tpu.dot_dimension_numbers<[1], [0], [0], [1], [0, 0, 1, 1], [], []>} : vector<16x16xf32>, vector<16x8xf32>, vector<16x8xf32> -> vector<16x8xf32>
    %111 = arith.addf %95, %110 : vector<16x8xf32>
    %112 = arith.addf %111, %80 : vector<16x8xf32>
    %cst_35 = arith.constant dense<0.000000e+00> : vector<16xf32>
    %113 = vector.multi_reduction <add>, %112, %cst_35 [1] : vector<16x8xf32> to vector<16xf32>
    %114 = vector.shape_cast %113 : vector<16xf32> to vector<16x1xf32>
    %cst_36 = arith.constant 8.000000e+00 : f32
    %115 = vector.broadcast %cst_36 : f32 to vector<16x1xf32>
    %116 = arith.divf %114, %115 : vector<16x1xf32>
    %117 = vector.broadcast %116 : vector<16x1xf32> to vector<16x8xf32>
    %118 = arith.subf %112, %117 : vector<16x8xf32>
    %119 = vector.broadcast %116 : vector<16x1xf32> to vector<16x8xf32>
    %120 = arith.subf %112, %119 : vector<16x8xf32>
    %121 = arith.mulf %118, %120 : vector<16x8xf32>
    %cst_37 = arith.constant dense<0.000000e+00> : vector<16xf32>
    %122 = vector.multi_reduction <add>, %121, %cst_37 [1] : vector<16x8xf32> to vector<16xf32>
    %123 = vector.shape_cast %122 : vector<16xf32> to vector<16x1xf32>
    %cst_38 = arith.constant 8.000000e+00 : f32
    %124 = vector.broadcast %cst_38 : f32 to vector<16x1xf32>
    %125 = arith.divf %123, %124 : vector<16x1xf32>
    %126 = vector.broadcast %116 : vector<16x1xf32> to vector<16x8xf32>
    %127 = arith.subf %112, %126 : vector<16x8xf32>
    %cst_39 = arith.constant 9.99999997E-7 : f32
    %128 = vector.broadcast %cst_39 : f32 to vector<16x1xf32>
    %129 = arith.addf %125, %128 : vector<16x1xf32>
    %130 = math.rsqrt %129 : vector<16x1xf32>
    %131 = vector.broadcast %130 : vector<16x1xf32> to vector<16x8xf32>
    %132 = arith.mulf %127, %131 : vector<16x8xf32>
    %133 = vector.broadcast %5 : vector<1x8xf32> to vector<16x8xf32>
    %134 = arith.mulf %132, %133 : vector<16x8xf32>
    %135 = vector.broadcast %6 : vector<1x8xf32> to vector<16x8xf32>
    %136 = arith.addf %134, %135 : vector<16x8xf32>
    %137 = vector.extract_strided_slice %136 {offsets = [0, 0], sizes = [8, 8], strides = [1, 1]} : vector<16x8xf32> to vector<8x8xf32>
    %138 = vector.extract_strided_slice %136 {offsets = [8, 0], sizes = [8, 8], strides = [1, 1]} : vector<16x8xf32> to vector<8x8xf32>
    %cst_40 = arith.constant dense<0.000000e+00> : vector<8x8xf32>
    %139 = tpu.matmul %137, %1, %cst_40 {dimension_numbers = #tpu.dot_dimension_numbers<[1], [0], [0], [1], [0, 0, 1, 1], [], []>} : vector<8x8xf32>, vector<8x8xf32>, vector<8x8xf32> -> vector<8x8xf32>
    %cst_41 = arith.constant dense<0.000000e+00> : vector<8x8xf32>
    %140 = tpu.matmul %138, %2, %cst_41 {dimension_numbers = #tpu.dot_dimension_numbers<[1], [0], [0], [1], [0, 0, 1, 1], [], []>} : vector<8x8xf32>, vector<8x8xf32>, vector<8x8xf32> -> vector<8x8xf32>
    %141 = arith.addf %139, %140 : vector<8x8xf32>
    %142 = vector.broadcast %4 : vector<1x8xf32> to vector<8x8xf32>
    %143 = arith.addf %141, %142 : vector<8x8xf32>
    %c8_42 = arith.constant 8 : index
    %c0_43 = arith.constant 0 : index
    %144 = vector.load %arg3[%c8_42, %c0_43] : memref<16x8xf32, #tpu.memory_space<vmem>>, vector<8x8xf32>
    tpu.vector_store %arg3[%c8_42, %c0_43], %143 {strides = array<i32>} : memref<16x8xf32, #tpu.memory_space<vmem>>, vector<8x8xf32>,
    return
  }
  func.func @transform_0(%arg0: i32) -> (i32, i32) {
    %c0_i32 = arith.constant 0 : i32
    %c0_i32_0 = arith.constant 0 : i32
    %c0_i32_1 = arith.constant 0 : i32
    return %c0_i32, %c0_i32_0 : i32, i32
  }
  func.func @transform_1(%arg0: i32) -> (i32, i32) {
    %c0_i32 = arith.constant 0 : i32
    %c0_i32_0 = arith.constant 0 : i32
    %c0_i32_1 = arith.constant 0 : i32
    return %c0_i32, %c0_i32_0 : i32, i32
  }
  func.func @transform_2(%arg0: i32) -> (i32, i32) {
    %c0_i32 = arith.constant 0 : i32
    %c0_i32_0 = arith.constant 0 : i32
    %c0_i32_1 = arith.constant 0 : i32
    return %c0_i32, %c0_i32_0 : i32, i32
  }
}

</mosaic_0001>

<bundles_post_ra>
// kernel: tpu_custom_call.1
= control target key start
LH: loop header
LB: loop body
LE: loop exit
PB: predicated region body
PF: predicated region fallthrough
CT: control target
= control target key end

     0   :  { %vm22_vm0 = vcmask 64512   ;;  %s1599_s19 = smov 116   ;;  %s1600_s20 = smov 108   ;;  %vm130_vm1 = vcmask 31744   ;;  %vm214_vm3 = vcmask 130048   ;;  %vm1606_vm4 = vmmov 0   ;;  %s1808_s1 = inlined_call_operand.vmem [shape: f32[27,40], index: 1, kind: input, shape index: {}]   ;;  %s1809_s0 = inlined_call_operand.vmem [shape: f32[32,8], index: 0, kind: input, shape index: {}]   ;;  %s1810_s2 = inlined_call_operand.vmem [shape: f32[16,8], index: 2, kind: output, shape index: {}]  }
   0x1   :  { %v11_v0 = vld [vmem:[%s1808_s1] sm:$0xff]  ;;  %v1304_v3 = vld [vmem:[%s1809_s0 + $0x10] ss:$2 sm:$0xff]  ;;  %v1305_v4 = vld [vmem:[%s1809_s0 + $0x11] ss:$2 sm:$0xff]  ;;  %s1602_s21 = smov 120  }
   0x2   :  { %v15_v1 = vld [vmem:[%s1809_s0] ss:$2 sm:$0xff]  ;;  %1383 = vmatprep.subr.mxu0 %v11_v0  ;;  %v1303_v2 = vld [vmem:[%s1809_s0 + $0x1] ss:$2 sm:$0xff]  ;;  %s1601_s0 = smov 112   ;;  %vm1668_vm2 = vmpackc.low %vm130_vm1, %vm130_vm1  ;;  %s1603_s22 = smov 96  }
   0x3   :  { %1385 = vmatprep.mubr.msk.f32.mxu0 %vm22_vm0, %v15_v1  ;;  %1384 = vmatpush3.msra.mxu0 %v11_v0  ;;  %s1604_s23 = smov 104  }
   0x4   :  { %1386 = vmatmul.mubr.msk.f32.vlgmr.msra.gmra.mrb[0].mxu0 %vm22_vm0, %v1303_v2 }
   0x5   :  { %1388 = vmatprep.mubr.msk.f32.mxu0 %vm22_vm0, %v1304_v3 }
   0x8   :  { %1389 = vmatmul.mubr.msk.f32.gmra.mrb[2].mxu0 %vm22_vm0, %v1305_v4 }
  0xd7   :  { %v1641_v5 = vpop.f32.mrb[0].mxu0 }
  0xd8   :  { %v1643_v6 = vpop.f32.mrb[1].mxu0 }
  0xd9   :  { %237 = vrot.lane.b32.xlu1 %v1643_v6, %s1599_s19  ;;  %v1649_v7 = vpack.i.bf16 %v1641_v5, %v1643_v6 }
  0xdb   :  { %1520 = vrot.lane.b32.xlu0 %v1649_v7, %s1600_s20  ;;  %v1661_v8 = vpop.f32.mrb[2].mxu0 }
  0xdc   :  { %v1663_v9 = vpop.f32.mrb[3].mxu0 }
  0xdd   :  { %239 = vrot.lane.b32.xlu1 %v1641_v5, %s1599_s19  ;;  %v1685_v23 = vpack.i.bf16 %v1661_v8, %v1663_v9 }
  0xdf   :  { %1525 = vrot.lane.b32.xlu0 %v1649_v7, %s1601_s0 }
  0xe1   :  { %124 = vrot.lane.b32.xlu1 %v1641_v5, %s1602_s21 }
  0xe3   :  { %122 = vrot.lane.b32.xlu0 %v1643_v6, %s1602_s21 }
 0x14b   :  { %v238_v10 = vpop.permute.xlu1 %237 }
 0x14c   :  { %1402 = vmatprep.mubr.msk.f32.mxu0 %vm130_vm1, %v238_v10 }
 0x14d   :  { %v1521_v11 = vpop.permute.xlu0 %1520 }
 0x14e   :  { %v1523_v12 = vunpack.i.h.bf16 %v1521_v11  ;;  %v1522_v13 = vunpack.i.l.bf16 %v1521_v11 }
 0x14f   :  { %v240_v21 = vpop.permute.xlu1 %239 }
 0x150   :  { %v1473_v15 = vpack.c.bf16 %v1523_v12, %v1522_v13 }
 0x151   :  { %v1526_v16 = vpop.permute.xlu0 %1525 }
 0x152   :  { %v1528_v17 = vunpack.i.h.bf16 %v1526_v16  ;;  %v1527_v18 = vunpack.i.l.bf16 %v1526_v16  ;;  %1475 = vmatprep.subr.msk.bf16.mxu0 %vm1668_vm2, %v1473_v15 }
 0x153   :  { %1478 = vmatpush3.bf16.xpose.msk.msra.mxu0 %vm1668_vm2, %v1473_v15  ;;  %v125_v22 = vpop.permute.xlu1 %124 }
 0x154   :  { %v1467_v19 = vpack.c.bf16 %v1528_v17, %v1527_v18 }
 0x155   :  { %v123_v20 = vpop.permute.xlu0 %122 }
 0x156   :  { %1469 = vmatprep.subr.msk.bf16.mxu1 %vm1668_vm2, %v1467_v19  ;;  %1395 = vmatprep.mubr.msk.f32.mxu1 %vm130_vm1, %v123_v20 }
 0x157   :  { %1472 = vmatpush3.bf16.xpose.msk.msra.mxu1 %vm1668_vm2, %v1467_v19 }
 0x15a   :  { %1403 = vmatmul.mubr.msk.f32.vlgmr.msra.gmra.mrb[4].mxu0 %vm130_vm1, %v240_v21 }
 0x15e   :  { %1396 = vmatmul.mubr.msk.f32.vlgmr.msra.gmra.mrb[0].mxu1 %vm130_vm1, %v125_v22 }
 0x22d   :  { %v1404_v24 = vpop.f32.mrb[4].mxu0 }
 0x22e   :  { %v319_v25 = vpop.f32.mrb[5].mxu0  ;;  %v331_v26 = vsel %vm214_vm3, %v1404_v24, -inf }
 0x22f   :  { %332 = vmax.xlane.f32.xlu1 %v331_v26  ;;  %v328_v27 = vsel %vm214_vm3, %v319_v25, -inf }
 0x230   :  { %329 = vmax.xlane.f32.xlu0 %v328_v27 }
 0x231   :  { %v1397_v28 = vpop.f32.mrb[0].mxu1 }
 0x232   :  { %v205_v29 = vpop.f32.mrb[1].mxu1  ;;  %v218_v31 = vsel %vm214_vm3, %v1397_v28, -inf }
 0x233   :  { %v215_v30 = vsel %vm214_vm3, %v205_v29, -inf }
 0x234   :  { %216 = vmax.xlane.f32.xlu0 %v215_v30 }
 0x238   :  { %219 = vmax.xlane.f32.xlu0 %v218_v31 }
 0x2bc   :  { %v333_v32 = vpop.xlane.xlu1 %332 }
 0x2bd   :  { %v335_v33 = vsub.f32 %v1404_v24, %v333_v32  ;;  %v330_v34 = vpop.xlane.xlu0 %329 }
 0x2be   :  { %v334_v35 = vsub.f32 %v319_v25, %v330_v34 }
 0x2bf   :  { %v338_v36 = vmul.f32 1.442695, %v335_v33  ;;  %v553_v33 = vlaneseq }
 0x2c0   :  { %v336_v37 = vmul.f32 1.442695, %v334_v35 }
 0x2c1   :  { %1559 = vpow2.f32 %v338_v36  ;;  %v217_v38 = vpop.xlane.xlu0 %216 }
 0x2c2   :  { %1561 = vpow2.f32 %v336_v37  ;;  %v221_v39 = vsub.f32 %v205_v29, %v217_v38  ;;  %v13_v29 = vld [vmem:[%s1808_s1 + $0x10] sm:$0xff] }
 0x2c4   :  { %v223_v40 = vmul.f32 1.442695, %v221_v39  ;;  %v554_v39 = vshrl.u32 %v553_v33, 7 }
 0x2c5   :  { %v220_v41 = vpop.xlane.xlu0 %219 }
 0x2c6   :  { %1563 = vpow2.f32 %v223_v40  ;;  %v222_v42 = vsub.f32 %v1397_v28, %v220_v41 }
 0x2c8   :  { %v225_v43 = vmul.f32 1.442695, %v222_v42 }
 0x2ca   :  { %1565 = vpow2.f32 %v225_v43 }
 0x2cb   :  { %v1560_v44 = vpop.eup %1559 }
 0x2cc   :  { %v1562_v45 = vpop.eup %1561  ;;  %v343_v46 = vsel %vm214_vm3, %v1560_v44, 0.0 }
 0x2cd   :  { %344 = vadd.xlane.f32.xlu0 %v343_v46  ;;  %v340_v47 = vsel %vm214_vm3, %v1562_v45, 0.0  ;;  %v14_v46 = vld [vmem:[%s1808_s1 + $0x18] sm:$0x7] }
 0x2ce   :  { %341 = vadd.xlane.f32.xlu1 %v340_v47  ;;  %v561_v47 = vsub.s32 2, %v554_v39 }
 0x2d0   :  { %v1564_v48 = vpop.eup %1563 }
 0x2d1   :  { %v227_v49 = vsel %vm214_vm3, %v1564_v48, 0.0 }
 0x2d2   :  { %228 = vadd.xlane.f32.xlu1 %v227_v49 }
 0x2d4   :  { %v1566_v50 = vpop.eup %1565 }
 0x2d5   :  { %v230_v51 = vsel %vm214_vm3, %v1566_v50, 0.0 }
 0x2d6   :  { %231 = vadd.xlane.f32.xlu0 %v230_v51 }
 0x2e3   :  { %1530 = vrot.lane.b32.xlu1 %v1649_v7, %s1603_s22 }
 0x2ec   :  { %1535 = vrot.lane.b32.xlu0 %v1649_v7, %s1604_s23 }
 0x35a   :  { %v345_v52 = vpop.xlane.xlu0 %344 }
 0x35b   :  { %v342_v53 = vpop.xlane.xlu1 %341 }
 0x35c   :  { %1567 = vrcp.f32 %v342_v53 }
 0x35d   :  { %1569 = vrcp.f32 %v345_v52  ;;  %v1738_v52 = vrot.slane %v14_v46, %v561_v47 }
 0x35f   :  { %v229_v54 = vpop.xlane.xlu1 %228 }
 0x360   :  { %1571 = vrcp.f32 %v229_v54 }
 0x363   :  { %v1531_v55 = vpop.permute.xlu1 %1530  ;;  %v232_v56 = vpop.xlane.xlu0 %231 }
 0x364   :  { %v1533_v57 = vunpack.i.h.bf16 %v1531_v55  ;;  %v1532_v58 = vunpack.i.l.bf16 %v1531_v55  ;;  %1573 = vrcp.f32 %v232_v56 }
 0x366   :  { %v1568_v59 = vpop.eup %1567  ;;  %v1479_v60 = vpack.c.bf16 %v1533_v57, %v1532_v58 }
 0x367   :  { %v1570_v61 = vpop.eup %1569  ;;  %v1536_v62 = vpop.permute.xlu0 %1535  ;;  %v348_v63 = vmul.f32 %v1568_v59, %v1562_v45  ;;  %v555_v45 = vsub.s32 1, %v554_v39 }
 0x368   :  { %v1538_v0 = vunpack.i.h.bf16 %v1536_v62  ;;  %v1537_v1 = vunpack.i.l.bf16 %v1536_v62  ;;  %1480 = vmatprep.subr.bf16.mxu1 %v1479_v60  ;;  %v349_v3 = vmul.f32 %v1570_v61, %v1560_v44 }
 0x369   :  { %1482 = vmatpush3.bf16.msra.mxu1 %v1479_v60  ;;  %1409 = vmatprep.mubr.msk.f32.mxu1 %vm214_vm3, %v348_v63  ;;  %v1736_v49 = vrot.slane %v14_v46, %v555_v45  ;;  %v1746_v60 = vld [vmem:[%s1808_s1 + $0x8] sm:$0xff] }
 0x36a   :  { %v1572_v2 = vpop.eup %1571  ;;  %v1483_v4 = vpack.c.bf16 %v1538_v0, %v1537_v1 }
 0x36b   :  { %v235_v7 = vmul.f32 %v1572_v2, %v1564_v48  ;;  %v713_v2 = vsub.s32 0, %v554_v39 }
 0x36c   :  { %1410 = vmatmul.mubr.msk.f32.vlgmr.msra.gmra.mrb[2].mxu1 %vm214_vm3, %v349_v3  ;;  %1484 = vmatprep.subr.bf16.mxu1 %v1483_v4 }
 0x36d   :  { %1486 = vmatpush3.bf16.msra.mxu1 %v1483_v4  ;;  %1416 = vmatprep.mubr.msk.f32.mxu1 %vm214_vm3, %v235_v7  ;;  %v1765_v7 = vrot.slane %v14_v46, %v713_v2 }
 0x36e   :  { %v1574_v10 = vpop.eup %1573 }
 0x36f   :  { %v236_v11 = vmul.f32 %v1574_v10, %v1566_v50 }
 0x374   :  { %1417 = vmatmul.mubr.msk.f32.vlgmr.msra.gmra.mrb[2].mxu1 %vm214_vm3, %v236_v11 }
 0x447   :  { %v1418_v12 = vpop.f32.mrb[2].mxu1 }
 0x448   :  { %v525_v13 = vadd.f32 %v1418_v12, %v1641_v5  ;;  %v515_v15 = vpop.f32.mrb[3].mxu1 }
 0x449   :  { %v524_v16 = vadd.f32 %v515_v15, %v1643_v6  ;;  %v1605_v6 = vmov 0.0  }
 0x44a   :  { %v529_v17 = vsel %vm22_vm0, %v525_v13, 0.0  ;;  %1419 = vmatprep.subr.mxu0 %v1605_v6  ;;  %1421 = vmatprep.mubr.msk.f32.mxu0 %vm1606_vm4, %v1605_v6 }
 0x44b   :  { %530 = vadd.xlane.f32.xlu1 %v529_v17  ;;  %v526_v18 = vsel %vm22_vm0, %v524_v16, 0.0  ;;  %1420 = vmatpush3.msra.mxu0 %v13_v29 }
 0x44c   :  { %527 = vadd.xlane.f32.xlu0 %v526_v18  ;;  %1424 = vmatprep.subr.mxu0 %v1605_v6 }
 0x4d8   :  { %v531_v19 = vpop.xlane.xlu1 %530 }
 0x4d9   :  { %v534_v20 = vmul.f32 0.125, %v531_v19  ;;  %v528_v21 = vpop.xlane.xlu0 %527 }
 0x4da   :  { %v533_v22 = vmul.f32 0.125, %v528_v21 }
 0x4db   :  { %v536_v24 = vsub.f32 %v525_v13, %v534_v20 }
 0x4dc   :  { %v535_v25 = vsub.f32 %v524_v16, %v533_v22 }
 0x4dd   :  { %v538_v26 = vmul.f32 %v536_v24, %v536_v24 }
 0x4de   :  { %v537_v27 = vmul.f32 %v535_v25, %v535_v25 }
 0x4df   :  { %v542_v28 = vsel %vm22_vm0, %v538_v26, 0.0 }
 0x4e0   :  { %543 = vadd.xlane.f32.xlu1 %v542_v28  ;;  %v539_v5 = vsel %vm22_vm0, %v537_v27, 0.0 }
 0x4e1   :  { %540 = vadd.xlane.f32.xlu0 %v539_v5 }
 0x4f1   :  { %1540 = vrot.lane.b32.xlu1 %v1685_v23, %s1600_s20 }
 0x4f5   :  { %832 = vrot.lane.b32.xlu1 %v1663_v9, %s1599_s19 }
 0x4f7   :  { %1545 = vrot.lane.b32.xlu0 %v1685_v23, %s1601_s0 }
 0x4f9   :  { %834 = vrot.lane.b32.xlu1 %v1661_v8, %s1599_s19 }
 0x4fb   :  { %719 = vrot.lane.b32.xlu0 %v1663_v9, %s1602_s21 }
 0x4fd   :  { %721 = vrot.lane.b32.xlu1 %v1661_v8, %s1602_s21 }
 0x56d   :  { %v544_v30 = vpop.xlane.xlu1 %543 }
 0x56e   :  { %v546_v31 = vmul.f32 0.125, %v544_v30  ;;  %v541_v32 = vpop.xlane.xlu0 %540 }
 0x56f   :  { %v545_v34 = vmul.f32 0.125, %v541_v32 }
 0x570   :  { %v548_v35 = vadd.f32 1e-06, %v546_v31 }
 0x571   :  { %v547_v36 = vadd.f32 1e-06, %v545_v34  ;;  %v1541_v37 = vpop.permute.xlu1 %1540 }
 0x572   :  { %1575 = vrsqrt.f32 %v548_v35  ;;  %v1546_v38 = vpop.permute.xlu0 %1545  ;;  %v1543_v56 = vunpack.i.h.bf16 %v1541_v37  ;;  %v1542_v57 = vunpack.i.l.bf16 %v1541_v37 }
 0x573   :  { %1577 = vrsqrt.f32 %v547_v36  ;;  %v1548_v40 = vunpack.i.h.bf16 %v1546_v38  ;;  %v1547_v41 = vunpack.i.l.bf16 %v1546_v38 }
 0x574   :  { %v1493_v62 = vpack.c.bf16 %v1543_v56, %v1542_v57 }
 0x575   :  { %v1487_v42 = vpack.c.bf16 %v1548_v40, %v1547_v41  ;;  %v833_v43 = vpop.permute.xlu1 %832 }
 0x576   :  { %v720_v44 = vpop.permute.xlu0 %719 }
 0x577   :  { %1489 = vmatprep.subr.msk.bf16.mxu1 %vm1668_vm2, %v1487_v42  ;;  %1433 = vmatprep.mubr.msk.f32.mxu1 %vm130_vm1, %v720_v44 }
 0x578   :  { %1492 = vmatpush3.bf16.xpose.msk.msra.mxu1 %vm1668_vm2, %v1487_v42 }
 0x579   :  { %v835_v48 = vpop.permute.xlu1 %834 }
 0x57c   :  { %v1576_v50 = vpop.eup %1575 }
 0x57d   :  { %v1578_v51 = vpop.eup %1577  ;;  %v552_v53 = vmul.f32 %v1576_v50, %v536_v24  ;;  %v722_v54 = vpop.permute.xlu1 %721 }
 0x57e   :  { %v551_v55 = vmul.f32 %v1578_v51, %v535_v25 }
 0x57f   :  { %1434 = vmatmul.mubr.msk.f32.vlgmr.msra.gmra.mrb[4].mxu1 %vm130_vm1, %v722_v54  ;;  %v558_v58 = vmul.f32 %v1736_v49, %v552_v53 }
 0x580   :  { %v557_v61 = vmul.f32 %v1736_v49, %v551_v55 }
 0x581   :  { %v564_v59 = vadd.f32 %v1738_v52, %v558_v58 }
 0x582   :  { %v563_v63 = vadd.f32 %v1738_v52, %v557_v61 }
 0x583   :  { %1422 = vmatmul.mubr.msk.f32.vlgmr.msra.gmra.mrb[6].mxu0 %vm22_vm0, %v564_v59 }
 0x584   :  { %1425 = vmatpush3.msra.mxu0 %v1746_v60  ;;  %1426 = vmatprep.mubr.msk.f32.mxu0 %vm1606_vm4, %v1605_v6 }
 0x585   :  { %1495 = vmatprep.subr.msk.bf16.mxu0 %vm1668_vm2, %v1493_v62 }
 0x587   :  { %1427 = vmatmul.mubr.msk.f32.vlgmr.msra.gmra.mrb[8].mxu0 %vm22_vm0, %v563_v63 }
 0x588   :  { %1440 = vmatprep.mubr.msk.f32.mxu0 %vm130_vm1, %v833_v43 }
 0x58b   :  { %1498 = vmatpush3.bf16.xpose.msk.msra.mxu0 %vm1668_vm2, %v1493_v62 }
 0x58c   :  { %1457 = vmatprep.subr.mxu0 %v1605_v6 }
 0x592   :  { %1441 = vmatmul.mubr.msk.f32.vlgmr.msra.gmra.mrb[10].mxu0 %vm130_vm1, %v835_v48 }
 0x593   :  { %1458 = vmatpush3.msra.mxu0 %v13_v29  ;;  %1459 = vmatprep.mubr.msk.f32.mxu0 %vm1606_vm4, %v1605_v6 }
 0x594   :  { %1462 = vmatprep.subr.mxu0 %v1605_v6 }
 0x652   :  { %v1435_v0 = vpop.f32.mrb[4].mxu1 }
 0x653   :  { %v801_v1 = vpop.f32.mrb[5].mxu1  ;;  %v813_v19 = vsel %vm214_vm3, %v1435_v0, -inf }
 0x654   :  { %v810_v18 = vsel %vm214_vm3, %v801_v1, -inf }
 0x656   :  { %v634_v3 = vpop.f32.mrb[6].mxu0 }
 0x657   :  { %v1423_v4 = vpop.f32.mrb[7].mxu0 }
 0x65a   :  { %v707_v10 = vpop.f32.mrb[8].mxu0 }
 0x65b   :  { %v708_v14 = vadd.f32 %v707_v10, %v634_v3  ;;  %v1428_v11 = vpop.f32.mrb[9].mxu0 }
 0x65d   :  { %v715_v12 = vadd.f32 %v1765_v7, %v708_v14 }
 0x65f   :  { %716 = vst.msk [vmem:[%s1810_s2] sm:$0xff] %vm22_vm0, %v715_v12 }
 0x665   :  { %v1442_v13 = vpop.f32.mrb[10].mxu0 }
 0x666   :  { %v914_v15 = vpop.f32.mrb[11].mxu0  ;;  %v926_v16 = vsel %vm214_vm3, %v1442_v13, -inf }
 0x667   :  { %927 = vmax.xlane.f32.xlu1 %v926_v16  ;;  %v923_v17 = vsel %vm214_vm3, %v914_v15, -inf }
 0x668   :  { %924 = vmax.xlane.f32.xlu0 %v923_v17 }
 0x66c   :  { %811 = vmax.xlane.f32.xlu0 %v810_v18 }
 0x670   :  { %814 = vmax.xlane.f32.xlu0 %v813_v19 }
 0x6f4   :  { %v928_v22 = vpop.xlane.xlu1 %927 }
 0x6f5   :  { %v925_v20 = vpop.xlane.xlu0 %924  ;;  %v930_v26 = vsub.f32 %v1442_v13, %v928_v22 }
 0x6f6   :  { %v929_v21 = vsub.f32 %v914_v15, %v925_v20 }
 0x6f7   :  { %v933_v30 = vmul.f32 1.442695, %v930_v26 }
 0x6f8   :  { %v931_v27 = vmul.f32 1.442695, %v929_v21 }
 0x6f9   :  { %v812_v24 = vpop.xlane.xlu0 %811 }
 0x6fa   :  { %v816_v25 = vsub.f32 %v801_v1, %v812_v24 }
 0x6fc   :  { %v818_v28 = vmul.f32 1.442695, %v816_v25 }
 0x6fd   :  { %v815_v5 = vpop.xlane.xlu0 %814 }
 0x6fe   :  { %1579 = vpow2.f32 %v818_v28  ;;  %v817_v29 = vsub.f32 %v1435_v0, %v815_v5 }
 0x6ff   :  { %1581 = vpow2.f32 %v931_v27 }
 0x700   :  { %v820_v31 = vmul.f32 1.442695, %v817_v29 }
 0x702   :  { %1583 = vpow2.f32 %v820_v31 }
 0x703   :  { %1585 = vpow2.f32 %v933_v30 }
 0x708   :  { %v1580_v32 = vpop.eup %1579 }
 0x709   :  { %v822_v33 = vsel %vm214_vm3, %v1580_v32, 0.0  ;;  %v1582_v34 = vpop.eup %1581 }
 0x70a   :  { %823 = vadd.xlane.f32.xlu1 %v822_v33  ;;  %v935_v36 = vsel %vm214_vm3, %v1582_v34, 0.0 }
 0x70c   :  { %v1584_v35 = vpop.eup %1583 }
 0x70d   :  { %v825_v37 = vsel %vm214_vm3, %v1584_v35, 0.0  ;;  %v1586_v38 = vpop.eup %1585 }
 0x70e   :  { %936 = vadd.xlane.f32.xlu1 %v935_v36  ;;  %826 = vadd.xlane.f32.xlu0 %v825_v37  ;;  %v938_v39 = vsel %vm214_vm3, %v1586_v38, 0.0 }
 0x712   :  { %939 = vadd.xlane.f32.xlu0 %v938_v39 }
 0x71f   :  { %1550 = vrot.lane.b32.xlu1 %v1685_v23, %s1603_s22 }
 0x728   :  { %1555 = vrot.lane.b32.xlu0 %v1685_v23, %s1604_s23 }
 0x797   :  { %v824_v40 = vpop.xlane.xlu1 %823 }
 0x79b   :  { %v937_v41 = vpop.xlane.xlu1 %936  ;;  %v827_v42 = vpop.xlane.xlu0 %826 }
 0x79c   :  { %1587 = vrcp.f32 %v937_v41 }
 0x79d   :  { %1589 = vrcp.f32 %v824_v40 }
 0x79f   :  { %v1551_v43 = vpop.permute.xlu1 %1550  ;;  %v940_v44 = vpop.xlane.xlu0 %939 }
 0x7a0   :  { %v1553_v45 = vunpack.i.h.bf16 %v1551_v43  ;;  %v1552_v46 = vunpack.i.l.bf16 %v1551_v43  ;;  %1591 = vrcp.f32 %v940_v44 }
 0x7a1   :  { %1593 = vrcp.f32 %v827_v42 }
 0x7a2   :  { %v1499_v47 = vpack.c.bf16 %v1553_v45, %v1552_v46 }
 0x7a3   :  { %v1556_v48 = vpop.permute.xlu0 %1555 }
 0x7a4   :  { %v1558_v50 = vunpack.i.h.bf16 %v1556_v48  ;;  %v1557_v51 = vunpack.i.l.bf16 %v1556_v48  ;;  %1500 = vmatprep.subr.bf16.mxu1 %v1499_v47 }
 0x7a5   :  { %1502 = vmatpush3.bf16.msra.mxu1 %v1499_v47 }
 0x7a6   :  { %v1588_v53 = vpop.eup %1587  ;;  %v1503_v54 = vpack.c.bf16 %v1558_v50, %v1557_v51 }
 0x7a7   :  { %v943_v23 = vmul.f32 %v1588_v53, %v1582_v34  ;;  %v1590_v55 = vpop.eup %1589 }
 0x7a8   :  { %1504 = vmatprep.subr.bf16.mxu1 %v1503_v54  ;;  %v830_v58 = vmul.f32 %v1590_v55, %v1580_v32 }
 0x7a9   :  { %1447 = vmatprep.mubr.msk.f32.mxu1 %vm214_vm3, %v943_v23 }
 0x7aa   :  { %v1592_v56 = vpop.eup %1591 }
 0x7ab   :  { %v944_v57 = vmul.f32 %v1592_v56, %v1586_v38  ;;  %v1594_v59 = vpop.eup %1593 }
 0x7ac   :  { %v831_v61 = vmul.f32 %v1594_v59, %v1584_v35 }
 0x7ad   :  { %1448 = vmatmul.mubr.msk.f32.vlgmr.msra.gmra.mrb[6].mxu1 %vm214_vm3, %v944_v57 }
 0x7ae   :  { %1506 = vmatpush3.bf16.msra.mxu1 %v1503_v54  ;;  %1454 = vmatprep.mubr.msk.f32.mxu1 %vm214_vm3, %v830_v58 }
 0x7b5   :  { %1455 = vmatmul.mubr.msk.f32.vlgmr.msra.gmra.mrb[6].mxu1 %vm214_vm3, %v831_v61 }
 0x888   :  { %v1456_v62 = vpop.f32.mrb[6].mxu1 }
 0x889   :  { %v1120_v63 = vadd.f32 %v1456_v62, %v1661_v8  ;;  %v1110_v0 = vpop.f32.mrb[7].mxu1 }
 0x88a   :  { %v1119_v1 = vadd.f32 %v1110_v0, %v1663_v9 }
 0x88b   :  { %v1124_v2 = vsel %vm22_vm0, %v1120_v63, 0.0 }
 0x88c   :  { %1125 = vadd.xlane.f32.xlu1 %v1124_v2  ;;  %v1121_v3 = vsel %vm22_vm0, %v1119_v1, 0.0 }
 0x88d   :  { %1122 = vadd.xlane.f32.xlu0 %v1121_v3 }
 0x919   :  { %v1126_v4 = vpop.xlane.xlu1 %1125 }
 0x91a   :  { %v1128_v10 = vmul.f32 0.125, %v1126_v4  ;;  %v1123_v14 = vpop.xlane.xlu0 %1122 }
 0x91b   :  { %v1127_v11 = vmul.f32 0.125, %v1123_v14 }
 0x91c   :  { %v1130_v12 = vsub.f32 %v1120_v63, %v1128_v10 }
 0x91d   :  { %v1129_v13 = vsub.f32 %v1119_v1, %v1127_v11 }
 0x91e   :  { %v1132_v15 = vmul.f32 %v1130_v12, %v1130_v12 }
 0x91f   :  { %v1131_v16 = vmul.f32 %v1129_v13, %v1129_v13 }
 0x920   :  { %v1136_v17 = vsel %vm22_vm0, %v1132_v15, 0.0 }
 0x921   :  { %1137 = vadd.xlane.f32.xlu1 %v1136_v17  ;;  %v1133_v8 = vsel %vm22_vm0, %v1131_v16, 0.0 }
 0x922   :  { %1134 = vadd.xlane.f32.xlu0 %v1133_v8 }
 0x9ae   :  { %v1138_v9 = vpop.xlane.xlu1 %1137 }
 0x9af   :  { %v1140_v18 = vmul.f32 0.125, %v1138_v9  ;;  %v1135_v19 = vpop.xlane.xlu0 %1134 }
 0x9b0   :  { %v1139_v20 = vmul.f32 0.125, %v1135_v19 }
 0x9b1   :  { %v1142_v21 = vadd.f32 1e-06, %v1140_v18 }
 0x9b2   :  { %v1141_v22 = vadd.f32 1e-06, %v1139_v20 }
 0x9b3   :  { %1595 = vrsqrt.f32 %v1142_v21 }
 0x9b4   :  { %1597 = vrsqrt.f32 %v1141_v22 }
 0x9bd   :  { %v1596_v24 = vpop.eup %1595 }
 0x9be   :  { %v1598_v25 = vpop.eup %1597  ;;  %v1146_v26 = vmul.f32 %v1596_v24, %v1130_v12 }
 0x9bf   :  { %v1145_v27 = vmul.f32 %v1598_v25, %v1129_v13 }
 0x9c0   :  { %v1148_v28 = vmul.f32 %v1146_v26, %v1736_v49 }
 0x9c1   :  { %v1147_v5 = vmul.f32 %v1145_v27, %v1736_v49 }
 0x9c2   :  { %v1150_v29 = vadd.f32 %v1148_v28, %v1738_v52 }
 0x9c3   :  { %v1149_v30 = vadd.f32 %v1147_v5, %v1738_v52 }
 0x9c4   :  { %1460 = vmatmul.mubr.msk.f32.vlgmr.msra.gmra.mrb[12].mxu0 %vm22_vm0, %v1150_v29 }
 0x9c5   :  { %1463 = vmatpush3.msra.mxu0 %v1746_v60  ;;  %1464 = vmatprep.mubr.msk.f32.mxu0 %vm1606_vm4, %v1605_v6 }
 0x9c8   :  { %1465 = vmatmul.mubr.msk.f32.vlgmr.msra.gmra.mrb[14].mxu0 %vm22_vm0, %v1149_v30 }
 0xa97   :  { %v1220_v31 = vpop.f32.mrb[12].mxu0 }
 0xa98   :  { %v1461_v32 = vpop.f32.mrb[13].mxu0 }
 0xa9b   :  { %v1293_v33 = vpop.f32.mrb[14].mxu0 }
 0xa9c   :  { %v1294_v34 = vadd.f32 %v1293_v33, %v1220_v31  ;;  %v1466_v35 = vpop.f32.mrb[15].mxu0 }
 0xa9e   :  { %v1297_v49 = vadd.f32 %v1294_v34, %v1765_v7 }
 0xaa0   :  { %1298 = vst.msk [vmem:[%s1810_s2 + $0x8] sm:$0xff] %vm22_vm0, %v1297_v49 }

</bundles_post_ra>
